<compile_context>
chip_gen: v5e
topology: v5e:2x2
jax: 0.10.0
libtpu: 0.0.40
codegen_flags: <defaults>
</compile_context>

<pallas_src>
import functools

import jax
import jax.numpy as jnp
from jax.experimental import pallas as pl
from jax.experimental.pallas import tpu as pltpu


_LANE_CANDIDATES = (1024, 512, 256, 128)
_SMALL_RAGGED_BYTES = 2 * 1024 * 1024   # single-VMEM-block threshold for ragged inputs


def _sigmoid_kernel(x_ref, o_ref):
    x = x_ref[...].astype(jnp.float32)
    # sigmoid(x) = 0.5 * tanh(0.5 * x) + 0.5 : one EUP op + two VALU ops per
    # element, no reciprocal; tanh saturates cleanly for large |x| (no overflow).
    y = 0.5 * jnp.tanh(0.5 * x) + 0.5
    o_ref[...] = y.astype(o_ref.dtype)


def _sublane_for(itemsize: int) -> int:
    table = {4: 8, 2: 16, 1: 32}
    assert itemsize in table, f"unsupported element size for TPU vector layout: {itemsize}"
    return table[itemsize]


@functools.lru_cache(maxsize=1)
def _chip_config():
    """Returns (block_bytes_per_buffer, tensorcores_per_device) for the local TPU."""
    block_bytes, num_tc = 2 * 1024 * 1024, 1           # conservative default (v5e / unknown)
    try:
        kind = jax.devices()[0].device_kind.lower()
    except Exception:                                   # pragma: no cover
        return block_bytes, num_tc
    if "v7" in kind or "7x" in kind:
        block_bytes, num_tc = 4 * 1024 * 1024, 2        # 64 MiB VMEM, 2 TCs/chip
    elif "v6" in kind:
        block_bytes, num_tc = 4 * 1024 * 1024, 1        # 128 MiB VMEM, 1 TC
    elif "v5p" in kind or "v4" in kind:
        num_tc = 2                                      # megacore chips
    return block_bytes, num_tc


def _cost(n: int, itemsize: int) -> pl.CostEstimate:
    return pl.CostEstimate(flops=3 * n, transcendentals=n,
                           bytes_accessed=2 * n * itemsize)


def _sigmoid_2d(x2d: jax.Array) -> jax.Array:
    """Sigmoid over a (rows, width) lane-dense slab (width % 128 == 0)."""
    rows, width = x2d.shape
    dtype = x2d.dtype
    itemsize = dtype.itemsize
    sublane = _sublane_for(itemsize)
    block_bytes, num_tc = _chip_config()

    if rows <= sublane:
        tile_rows = rows          # full-extent row block (always legal)
    else:
        rows_aligned = (rows // sublane) * sublane      # >= sublane here
        tile_rows = (block_bytes // (width * itemsize)) // sublane * sublane
        tile_rows = max(sublane, min(tile_rows, rows_aligned))
        if num_tc > 1:
            # Keep >= 2 grid steps per TensorCore so each core still overlaps
            # prefetch / compute / writeback.  Skipped on 1-TC chips (overhead).
            min_steps = 2 * num_tc
            if rows >= min_steps * sublane:
                cap = pl.cdiv(pl.cdiv(rows, min_steps), sublane) * sublane
                tile_rows = max(sublane, min(tile_rows, cap))

    grid = (pl.cdiv(rows, tile_rows),)
    tile_bytes = tile_rows * width * itemsize
    # Explicit scoped-VMEM budget: double-buffered in + out tiles plus headroom,
    # so the bigger v6e/v7x tiles can never silently regress on v5e defaults.
    vmem_limit = 4 * tile_bytes + 8 * 1024 * 1024

    return pl.pallas_call(
        _sigmoid_kernel,
        out_shape=jax.ShapeDtypeStruct((rows, width), dtype),
        grid=grid,
        in_specs=[pl.BlockSpec((tile_rows, width), lambda i: (i, 0))],
        out_specs=pl.BlockSpec((tile_rows, width), lambda i: (i, 0)),
        compiler_params=pltpu.CompilerParams(
            dimension_semantics=("parallel",),
            vmem_limit_bytes=vmem_limit),
        cost_estimate=_cost(rows * width, itemsize),
    )(x2d)


def sigmoid_block(x: jax.Array) -> jax.Array:
    """Elementwise sigmoid over an arbitrary-shaped array via Pallas TPU kernels."""
    orig_shape = x.shape
    dtype = x.dtype
    n = x.size
    if n == 0:
        return x

    itemsize = dtype.itemsize
    x_flat = jnp.reshape(x, (-1,))

    # Fast path: widest lane width dividing numel -> free reshape, no pad/slice.
    width = next((w for w in _LANE_CANDIDATES if n % w == 0), None)
    if width is not None:
        y2d = _sigmoid_2d(jnp.reshape(x_flat, (n // width, width)))
        return jnp.reshape(y2d, orig_shape)

    sublane = _sublane_for(itemsize)

    # Small ragged: single full-extent VMEM block shaped (sublane, n/sublane) so
    # all sublanes of each vreg are occupied (vs. the old (1, n) row).
    if n * itemsize <= _SMALL_RAGGED_BYTES and n % sublane == 0:
        x2 = jnp.reshape(x_flat, (sublane, n // sublane))
        y2 = pl.pallas_call(
            _sigmoid_kernel,
            out_shape=jax.ShapeDtypeStruct(x2.shape, dtype),
            cost_estimate=_cost(n, itemsize),
        )(x2)
        return jnp.reshape(y2, orig_shape)

    # Ragged fallback: minimal zero-pad to a 1024-wide lane-dense slab, fast 2-D
    # path, then slice back.
    # TODO(synk): replace pad+slice (2 extra HBM passes) with an in-kernel masked
    # tail store; that needs a rank-1 blocked view whose 1-sublane vreg layout is
    # currently a worse trade than the extra HBM pass for this memory-bound op.
    padded = pl.cdiv(n, 1024) * 1024
    x_pad = jnp.pad(x_flat, (0, padded - n))
    y_pad = _sigmoid_2d(jnp.reshape(x_pad, (padded // 1024, 1024)))
    return jnp.reshape(jnp.reshape(y_pad, (-1,))[:n], orig_shape)


if __name__ == "__main__":
    key = jax.random.PRNGKey(0)
    # Small NCHW input consistent with the PyTorch module's usage.
    x = jax.random.normal(key, (2, 4, 16, 16), dtype=jnp.float32)

    y = sigmoid_block(x)
    jax.block_until_ready(y)

    # Sanity check against plain JAX sigmoid.
    y_ref = jax.nn.sigmoid(x)
    assert y.shape == x.shape and y.dtype == x.dtype
    assert jnp.allclose(y, y_ref, atol=1e-5, rtol=1e-5)

    print("KERNEL_OK")
</pallas_src>

<mosaic_0001>
module attributes {stable_mosaic.version = 11 : i64} {
  func.func @_sigmoid_kernel(%arg0: i32, %arg1: memref<2x1024xf32, #tpu.memory_space<vmem>>, %arg2: memref<2x1024xf32, #tpu.memory_space<vmem>>) attributes {dimension_semantics = [#tpu.dimension_semantics<parallel>], iteration_bounds = array<i64: 1>, scalar_prefetch = 0 : i64, scratch_operands = 0 : i64, tpu.core_type = #tpu.core_type<tc>, window_params = [{transform_indices = @transform_0, window_bounds = array<i64: 2, 1024>}, {transform_indices = @transform_1, window_bounds = array<i64: 2, 1024>}]} {
    %c0 = arith.constant 0 : index
    %c0_0 = arith.constant 0 : index
    %0 = vector.load %arg1[%c0, %c0_0] : memref<2x1024xf32, #tpu.memory_space<vmem>>, vector<2x1024xf32>
    %cst = arith.constant 5.000000e-01 : f32
    %1 = vector.broadcast %cst : f32 to vector<2x1024xf32>
    %2 = arith.mulf %1, %0 : vector<2x1024xf32>
    %3 = math.tanh %2 : vector<2x1024xf32>
    %cst_1 = arith.constant 5.000000e-01 : f32
    %4 = vector.broadcast %cst_1 : f32 to vector<2x1024xf32>
    %5 = arith.mulf %4, %3 : vector<2x1024xf32>
    %cst_2 = arith.constant 5.000000e-01 : f32
    %6 = vector.broadcast %cst_2 : f32 to vector<2x1024xf32>
    %7 = arith.addf %5, %6 : vector<2x1024xf32>
    %c0_3 = arith.constant 0 : index
    %c0_4 = arith.constant 0 : index
    %8 = vector.load %arg2[%c0_3, %c0_4] : memref<2x1024xf32, #tpu.memory_space<vmem>>, vector<2x1024xf32>
    tpu.vector_store %arg2[%c0_3, %c0_4], %7 {strides = array<i32>} : memref<2x1024xf32, #tpu.memory_space<vmem>>, vector<2x1024xf32>,
    return
  }
  func.func @transform_0(%arg0: i32) -> (i32, i32) {
    %c0_i32 = arith.constant 0 : i32
    %c0_i32_0 = arith.constant 0 : i32
    return %arg0, %c0_i32 : i32, i32
  }
  func.func @transform_1(%arg0: i32) -> (i32, i32) {
    %c0_i32 = arith.constant 0 : i32
    %c0_i32_0 = arith.constant 0 : i32
    return %arg0, %c0_i32 : i32, i32
  }
}

</mosaic_0001>

<bundles_post_ra>
// kernel: tpu_custom_call.1
= control target key start
LH: loop header
LB: loop body
LE: loop exit
PB: predicated region body
PF: predicated region fallthrough
CT: control target
= control target key end

     0   :  { %6 = vsyncpa [#allocation3], 0  ;;  %s128_s0 = inlined_call_operand.hbm [shape: f32[2,1024], index: 0, kind: input, shape index: {}]   ;;  %s129_s1 = inlined_call_operand.hbm [shape: f32[2,1024], index: 1, kind: output, shape index: {}]  }
   0x1   :  { %7 = vsyncpa [#allocation4], 0  ;;  %s13_s8 = sshll.u32 %s128_s0, 4  ;;  %s110_s9 = smov [#allocation2]   ;;  %s14_s8 = int_to_ptr.hbm [resolvable:$true] %s13_s8 }
   0x2   :  { %s15_s10 = sshll.u32 %s110_s9, 4  ;;  %s16_s10 = int_to_ptr.vmem [resolvable:$true] %s15_s10 }
   0x3   :  { %18 = dma.hbm_to_vmem [thread:$0]  %s14_s8, 256, %s16_s10, [#allocation3]  }
   0x4   :  { %106 = dma.done.wait [#allocation3], 256  }
   0x5   :  { %107 = vsyncadd [#allocation3], 4294967040  ;;  %v23_v0 = vld [vmem:[#allocation2] sm:$0xff]  ;;  %v24_v1 = vld [vmem:[#allocation2 + $0x8] sm:$0xff]  ;;  %s111_s11 = smov [#allocation5]   ;;  %s42_s14 = sshll.u32 %s129_s1, 4  ;;  %s43_s14 = int_to_ptr.hbm [resolvable:$true] %s42_s14 }
   0x6   :  { %v25_v2 = vmul.f32 0.5, %v23_v0  ;;  %v26_v3 = vmul.f32 0.5, %v24_v1  ;;  %s40_s12 = sshll.u32 %s111_s11, 4  ;;  %s41_s12 = int_to_ptr.vmem [resolvable:$true] %s40_s12 }
   0x8   :  { %54 = vtanh.f32 %v25_v2 }
   0x9   :  { %56 = vtanh.f32 %v26_v3 }
   0xe   :  { %v55_v4 = vpop.eup %54 }
   0xf   :  { %v57_v5 = vpop.eup %56  ;;  %v29_v6 = vmul.f32 0.5, %v55_v4 }
  0x10   :  { %v30_v7 = vmul.f32 0.5, %v57_v5 }
  0x11   :  { %v31_v8 = vadd.f32 0.5, %v29_v6 }
  0x12   :  { %v32_v9 = vadd.f32 0.5, %v30_v7 }
  0x13   :  { %33 = vst [vmem:[#allocation5] sm:$0xff] %v31_v8 }
  0x14   :  { %34 = vst [vmem:[#allocation5 + $0x8] sm:$0xff] %v32_v9 }
  0x15   :  { %45 = dma.vmem_to_hbm [thread:$0]  %s41_s12, 256, %s43_s14, [#allocation4]  }
  0x16   :  { %108 = dma.done.wait [#allocation4], 256  }
  0x17   :  { %109 = vsyncadd [#allocation4], 4294967040 }
  0x18   :  { %50 = vsyncpa [#allocation3], 1 }
  0x19   :  { %51 = vsyncpa [#allocation4], 1 }

</bundles_post_ra>
